<compile_context>
chip_gen: v6e
topology: v6e:2x2x1
jax: 0.10.0
libtpu: 0.0.40
codegen_flags: <defaults>
</compile_context>

<pallas_src>
import functools

import jax
import jax.numpy as jnp
from jax.experimental import pallas as pl
from jax.experimental.pallas import tpu as pltpu


def _dbow_kernel(d_ref, o_ref, out_ref):
    # d_ref:   (TB, V)     paragraph vectors for this batch tile
    # o_ref:   (TB, N, V)  gathered output-word vectors (rows of O^T)
    # out_ref: (TB, N)     unnormalized log-probabilities (scores)
    d = d_ref[...].astype(jnp.float32)          # (TB, V)
    o = o_ref[...].astype(jnp.float32)          # (TB, N, V)
    # VPU multiply (broadcast over the N sublane dim) + XLU reduction over the
    # lane axis V.  Avoids degenerate M=1 MXU matmuls.
    scores = jnp.sum(d[:, None, :] * o, axis=-1)   # (TB, N), f32 accumulation
    out_ref[...] = scores.astype(out_ref.dtype)


def _choose_tb(batch, n, v, vmem_budget_bytes=16 * 1024 * 1024):
    """Pick a batch-tile size TB (multiple of 8) sized for v7x VMEM."""
    v_pad = pl.cdiv(v, 128) * 128          # lane padding of the V axis
    n_pad = pl.cdiv(n, 8) * 8              # sublane padding of the N axis
    # The double-buffered o tile dominates VMEM: 2 * TB * n_pad * v_pad * 4B.
    per_row_bytes = 2 * n_pad * v_pad * 4
    tb = max(8, min(512, (vmem_budget_bytes // per_row_bytes) // 8 * 8))
    b_pad8 = pl.cdiv(batch, 8) * 8
    return min(tb, b_pad8)


@functools.partial(jax.jit, static_argnames=("compute_dtype",))
def dbow_forward(D, O, doc_ids, target_noise_ids, compute_dtype=jnp.float32):
    """Pallas implementation of DBOW.forward.

    D:                (num_docs, vec_dim) float32
    O:                (vec_dim, num_words) float32
    doc_ids:          (B,) int32
    target_noise_ids: (B, N) int32   (N = num_noise_words + 1)
    returns:          (B, N) float32
    """
    B = doc_ids.shape[0]
    N = target_noise_ids.shape[1]
    V = D.shape[1]

    # ---- gathers (plain JAX glue; no big transpose) -------------------------
    d_vecs = D[doc_ids, :].astype(compute_dtype)                  # (B, V)
    O_T = jnp.swapaxes(O, 0, 1)                                   # (W, V), tiny
    o_vecs = jnp.take(O_T, target_noise_ids, axis=0)              # (B, N, V)
    o_vecs = o_vecs.astype(compute_dtype)

    # ---- batch tiling --------------------------------------------------------
    tb = _choose_tb(B, N, V)
    b_pad = pl.cdiv(B, tb) * tb
    if b_pad != B:
        d_vecs = jnp.pad(d_vecs, ((0, b_pad - B), (0, 0)))
        o_vecs = jnp.pad(o_vecs, ((0, b_pad - B), (0, 0), (0, 0)))

    grid = (b_pad // tb,)

    out = pl.pallas_call(
        _dbow_kernel,
        out_shape=jax.ShapeDtypeStruct((b_pad, N), jnp.float32),
        grid=grid,
        in_specs=[
            # Last dims equal the full array dims, so the (8, 128) rule is
            # satisfied via the full-extent exception; TB is a multiple of 8.
            pl.BlockSpec((tb, V), lambda i: (i, 0)),
            pl.BlockSpec((tb, N, V), lambda i: (i, 0, 0)),
        ],
        out_specs=pl.BlockSpec((tb, N), lambda i: (i, 0)),
        compiler_params=pltpu.CompilerParams(
            dimension_semantics=("parallel",),
        ),
        cost_estimate=pl.CostEstimate(
            flops=2 * b_pad * N * V,
            transcendentals=0,
            bytes_accessed=(b_pad * V + b_pad * N * V + b_pad * N)
            * jnp.dtype(compute_dtype).itemsize,
        ),
    )(d_vecs, o_vecs)

    return out[:B]


def _reference(D, O, doc_ids, target_noise_ids):
    # Pure-JAX reference of the torch.bmm semantics.
    d = D[doc_ids, :]                                         # (B, V)
    o = jnp.transpose(O[:, target_noise_ids], (1, 0, 2))      # (B, V, N)
    return jnp.einsum("bv,bvn->bn", d, o)


if __name__ == "__main__":
    key = jax.random.PRNGKey(0)

    # --- Case 1: small shapes consistent with the module ---------------------
    vec_dim, num_docs, num_words = 32, 16, 64
    batch, n_plus_1 = 2, 8  # num_noise_words + 1

    k_d, k_o, k_doc, k_tgt, key = jax.random.split(key, 5)
    D = jax.random.normal(k_d, (num_docs, vec_dim), dtype=jnp.float32)
    # _O is zero-initialized in the module; use small random values so the
    # output is non-trivial to verify (same shapes/dtypes as the parameters).
    O = 0.1 * jax.random.normal(k_o, (vec_dim, num_words), dtype=jnp.float32)
    doc_ids = jax.random.randint(k_doc, (batch,), 0, num_docs, dtype=jnp.int32)
    target_noise_ids = jax.random.randint(
        k_tgt, (batch, n_plus_1), 0, num_words, dtype=jnp.int32
    )

    out = jax.block_until_ready(dbow_forward(D, O, doc_ids, target_noise_ids))
    ref = _reference(D, O, doc_ids, target_noise_ids)
    assert out.shape == (batch, n_plus_1)
    assert jnp.allclose(out, ref, atol=1e-5, rtol=1e-5)

    # --- Case 2: larger / non-aligned shapes to exercise the tiling ----------
    vec_dim2, num_docs2, num_words2 = 100, 37, 500
    batch2, n_plus_12 = 200, 7

    k_d, k_o, k_doc, k_tgt, key = jax.random.split(key, 5)
    D2 = jax.random.normal(k_d, (num_docs2, vec_dim2), dtype=jnp.float32)
    O2 = 0.1 * jax.random.normal(k_o, (vec_dim2, num_words2), dtype=jnp.float32)
    doc_ids2 = jax.random.randint(k_doc, (batch2,), 0, num_docs2, dtype=jnp.int32)
    target_noise_ids2 = jax.random.randint(
        k_tgt, (batch2, n_plus_12), 0, num_words2, dtype=jnp.int32
    )

    out2 = jax.block_until_ready(dbow_forward(D2, O2, doc_ids2, target_noise_ids2))
    ref2 = _reference(D2, O2, doc_ids2, target_noise_ids2)
    assert out2.shape == (batch2, n_plus_12)
    assert jnp.allclose(out2, ref2, atol=1e-4, rtol=1e-4)

    print("KERNEL_OK")
</pallas_src>

<mosaic_0001>
module attributes {stable_mosaic.version = 11 : i64} {
  func.func @_dbow_kernel(%arg0: i32, %arg1: memref<8x32xf32, #tpu.memory_space<vmem>>, %arg2: memref<8x8x32xf32, #tpu.memory_space<vmem>>, %arg3: memref<8x8xf32, #tpu.memory_space<vmem>>) attributes {dimension_semantics = [#tpu.dimension_semantics<parallel>], iteration_bounds = array<i64: 1>, scalar_prefetch = 0 : i64, scratch_operands = 0 : i64, tpu.core_type = #tpu.core_type<tc>, window_params = [{transform_indices = @transform_0, window_bounds = array<i64: 8, 32>}, {transform_indices = @transform_1, window_bounds = array<i64: 8, 8, 32>}, {transform_indices = @transform_2, window_bounds = array<i64: 8, 8>}]} {
    %c0 = arith.constant 0 : index
    %c0_0 = arith.constant 0 : index
    %0 = vector.load %arg1[%c0, %c0_0] : memref<8x32xf32, #tpu.memory_space<vmem>>, vector<8x32xf32>
    %c0_1 = arith.constant 0 : index
    %c0_2 = arith.constant 0 : index
    %c0_3 = arith.constant 0 : index
    %1 = vector.load %arg2[%c0_1, %c0_2, %c0_3] : memref<8x8x32xf32, #tpu.memory_space<vmem>>, vector<8x8x32xf32>
    %2 = vector.shape_cast %0 : vector<8x32xf32> to vector<8x1x32xf32>
    %3 = vector.broadcast %2 : vector<8x1x32xf32> to vector<8x8x32xf32>
    %4 = arith.mulf %3, %1 : vector<8x8x32xf32>
    %cst = arith.constant dense<0.000000e+00> : vector<8x8xf32>
    %5 = vector.multi_reduction <add>, %4, %cst [2] : vector<8x8x32xf32> to vector<8x8xf32>
    %c0_4 = arith.constant 0 : index
    %c0_5 = arith.constant 0 : index
    %6 = vector.load %arg3[%c0_4, %c0_5] : memref<8x8xf32, #tpu.memory_space<vmem>>, vector<8x8xf32>
    tpu.vector_store %arg3[%c0_4, %c0_5], %5 {strides = array<i32>} : memref<8x8xf32, #tpu.memory_space<vmem>>, vector<8x8xf32>,
    return
  }
  func.func @transform_0(%arg0: i32) -> (i32, i32) {
    %c0_i32 = arith.constant 0 : i32
    %c0_i32_0 = arith.constant 0 : i32
    return %arg0, %c0_i32 : i32, i32
  }
  func.func @transform_1(%arg0: i32) -> (i32, i32, i32) {
    %c0_i32 = arith.constant 0 : i32
    %c0_i32_0 = arith.constant 0 : i32
    %c0_i32_1 = arith.constant 0 : i32
    return %arg0, %c0_i32, %c0_i32_0 : i32, i32, i32
  }
  func.func @transform_2(%arg0: i32) -> (i32, i32) {
    %c0_i32 = arith.constant 0 : i32
    %c0_i32_0 = arith.constant 0 : i32
    return %arg0, %c0_i32 : i32, i32
  }
}

</mosaic_0001>

<bundles_post_ra>
// kernel: dbow_forward.1
= control target key start
LH: loop header
LB: loop body
LE: loop exit
PB: predicated region body
PF: predicated region fallthrough
CT: control target
= control target key end

     0   :  { %v25_v0 = vlaneseq  ;;  %v208_v1 = vmov 1966171168   ;;  %vm118_vm0 = vcmask 261120   ;;  %vm185_vm1 = vcmask 1041409   ;;  %s272_s0 = inlined_call_operand.vmem [shape: f32[8,32], index: 0, kind: input, shape index: {}]   ;;  %s273_s1 = inlined_call_operand.vmem [shape: f32[8,8,32], index: 1, kind: input, shape index: {}]   ;;  %s274_s2 = inlined_call_operand.vmem [shape: f32[8,8], index: 2, kind: output, shape index: {}]  }
   0x1   :  { %v23_v2 = vunpack.c.l.s4 %v208_v1  ;;  %v11_v3 = vld [vmem:[%s272_s0] sm:$0xff]  ;;  %v14_v22 = vld [vmem:[%s273_s1 + $0x10] sm:$0xff]  ;;  %v13_v23 = vld [vmem:[%s273_s1 + $0x8] sm:$0xff]  ;;  %vm187_vm2 = vcmask 1042434   ;;  %vm189_vm3 = vcmask 1043459   ;;  %vm191_vm4 = vcmask 1044484  }
   0x2   :  { %v26_v4 = vshrl.u32 %v25_v0, 7  ;;  %v152_v5 = vand.u32 127, %v25_v0  ;;  %v21_v7 = vcombine.high %v11_v3, %v11_v3  ;;  %v12_v17 = vld [vmem:[%s273_s1] sm:$0xff]  ;;  %v17_v24 = vld [vmem:[%s273_s1 + $0x28] sm:$0xff]  ;;  %v15_v38 = vld [vmem:[%s273_s1 + $0x18] sm:$0xff]  ;;  %vm193_vm5 = vcmask 1045509  }
   0x3   :  { %v24_v6 = vunpack.c.0.s8 %v23_v2  ;;  %v16_v31 = vld [vmem:[%s273_s1 + $0x20] sm:$0xff]  ;;  %v18_v44 = vld [vmem:[%s273_s1 + $0x30] sm:$0xff]  ;;  %v19_v48 = vld [vmem:[%s273_s1 + $0x38] sm:$0xff]  ;;  %vm195_vm6 = vcmask 1046534   ;;  %vm197_vm7 = vcmask 1047559   ;;  %vm200_vm8 = vcmask 64512  }
   0x4   :  { %v227_v8 = vsub.s32 %v152_v5, %v26_v4  ;;  %v72_v11 = vsub.s32 0, %v26_v4 }
   0x5   :  { %v27_v9 = vsub.s32 %v24_v6, %v26_v4 }
   0x7   :  { %v28_v10 = vrot.slane %v11_v3, %v27_v9  ;;  %v35_v12 = vrot.slane %v21_v7, %v27_v9 }
   0x9   :  { %v44_v13 = vrot.slane %v28_v10, %v27_v9  ;;  %v36_v14 = vcombine.high %v28_v10, %v28_v10  ;;  %v37_v15 = vcombine.high %v35_v12, %v35_v12  ;;  %v51_v16 = vrot.slane %v35_v12, %v27_v9 }
   0xb   :  { %v73_v18 = vrot.slane %v44_v13, %v72_v11  ;;  %v66_v19 = vcombine.high %v44_v13, %v44_v13  ;;  %v58_v20 = vrot.slane %v36_v14, %v27_v9  ;;  %v65_v21 = vrot.slane %v37_v15, %v27_v9 }
   0xc   :  { %v89_v25 = vrot.slane %v51_v16, %v72_v11  ;;  %v67_v26 = vcombine.high %v51_v16, %v51_v16 }
   0xd   :  { %v110_v27 = vmul.f32 %v73_v18, %v12_v17  ;;  %v81_v28 = vrot.slane %v66_v19, %v72_v11  ;;  %v77_v29 = vrot.slane %v58_v20, %v72_v11  ;;  %v93_v30 = vrot.slane %v65_v21, %v72_v11 }
   0xe   :  { %v68_v32 = vcombine.high %v58_v20, %v58_v20  ;;  %v69_v33 = vcombine.high %v65_v21, %v65_v21  ;;  %v114_v42 = vmul.f32 %v89_v25, %v16_v31  ;;  %v97_v43 = vrot.slane %v67_v26, %v72_v11 }
   0xf   :  { %v119_v34 = vsel %vm118_vm0, %v110_v27, 0.0  ;;  %v112_v35 = vmul.f32 %v81_v28, %v14_v22  ;;  %v111_v36 = vmul.f32 %v77_v29, %v13_v23  ;;  %v115_v37 = vmul.f32 %v93_v30, %v17_v24 }
  0x10   :  { %120 = vadd.xlane.f32.xlu0 %v119_v34  ;;  %v85_v39 = vrot.slane %v68_v32, %v72_v11  ;;  %v101_v47 = vrot.slane %v69_v33, %v72_v11  ;;  %v131_v49 = vsel %vm118_vm0, %v114_v42, 0.0  ;;  %v116_v50 = vmul.f32 %v97_v43, %v18_v44 }
  0x11   :  { %v125_v40 = vsel %vm118_vm0, %v112_v35, 0.0  ;;  %v122_v41 = vsel %vm118_vm0, %v111_v36, 0.0  ;;  %v134_v45 = vsel %vm118_vm0, %v115_v37, 0.0 }
  0x12   :  { %126 = vadd.xlane.f32.xlu1 %v125_v40  ;;  %v113_v46 = vmul.f32 %v85_v39, %v15_v38  ;;  %v117_v52 = vmul.f32 %v101_v47, %v19_v48  ;;  %v137_v53 = vsel %vm118_vm0, %v116_v50, 0.0 }
  0x14   :  { %123 = vadd.xlane.f32.xlu0 %v122_v41  ;;  %v128_v51 = vsel %vm118_vm0, %v113_v46, 0.0  ;;  %v140_v54 = vsel %vm118_vm0, %v117_v52, 0.0 }
  0x16   :  { %135 = vadd.xlane.f32.xlu1 %v134_v45 }
  0x18   :  { %132 = vadd.xlane.f32.xlu0 %v131_v49 }
  0x1a   :  { %129 = vadd.xlane.f32.xlu1 %v128_v51 }
  0x1c   :  { %138 = vadd.xlane.f32.xlu0 %v137_v53 }
  0x1e   :  { %141 = vadd.xlane.f32.xlu1 %v140_v54 }
  0x99   :  { %v121_v55 = vpop.xlane.xlu0 %120 }
  0x9a   :  { %v156_v60 = vrot.slane %v121_v55, %v227_v8 }
  0x9b   :  { %v127_v56 = vpop.xlane.xlu1 %126 }
  0x9c   :  { %v164_v63 = vrot.slane %v127_v56, %v227_v8 }
  0x9d   :  { %v124_v57 = vpop.xlane.xlu0 %123 }
  0x9e   :  { %v160_v58 = vrot.slane %v124_v57, %v227_v8 }
  0x9f   :  { %v136_v59 = vpop.xlane.xlu1 %135 }
  0xa0   :  { %v186_v62 = vsel %vm185_vm1, %v160_v58, %v156_v60  ;;  %v176_v5 = vrot.slane %v136_v59, %v227_v8 }
  0xa1   :  { %v133_v61 = vpop.xlane.xlu0 %132  ;;  %v188_v3 = vsel %vm187_vm2, %v164_v63, %v186_v62 }
  0xa2   :  { %v172_v2 = vrot.slane %v133_v61, %v227_v8 }
  0xa3   :  { %v130_v0 = vpop.xlane.xlu1 %129 }
  0xa4   :  { %v168_v1 = vrot.slane %v130_v0, %v227_v8 }
  0xa5   :  { %v139_v4 = vpop.xlane.xlu0 %138 }
  0xa6   :  { %v190_v6 = vsel %vm189_vm3, %v168_v1, %v188_v3  ;;  %v180_v7 = vrot.slane %v139_v4, %v227_v8 }
  0xa7   :  { %v192_v9 = vsel %vm191_vm4, %v172_v2, %v190_v6  ;;  %v142_v10 = vpop.xlane.xlu1 %141 }
  0xa8   :  { %v194_v11 = vsel %vm193_vm5, %v176_v5, %v192_v9  ;;  %v184_v12 = vrot.slane %v142_v10, %v227_v8 }
  0xa9   :  { %v196_v13 = vsel %vm195_vm6, %v180_v7, %v194_v11 }
  0xaa   :  { %v198_v14 = vsel %vm197_vm7, %v184_v12, %v196_v13 }
  0xab   :  { %201 = vst.msk [vmem:[%s274_s2] sm:$0xff] %vm200_vm8, %v198_v14 }

</bundles_post_ra>
